<compile_context>
chip_gen: v6e
topology: v6e:2x2x1
jax: 0.10.0
libtpu: 0.0.40
codegen_flags: <defaults>
</compile_context>

<pallas_src>
import jax
import jax.numpy as jnp
from jax.experimental import pallas as pl
from jax.experimental.pallas import tpu as pltpu


def _conv_matmul_kernel(w_ref, b_ref, p_ref, o_ref):
    # w_ref: (Cout, K)          resident weight matrix
    # b_ref: (Cout, 1)          resident bias column (f32)
    # p_ref: (1, K, tile_m)     im2col patch tile for one batch element
    # o_ref: (1, Cout, tile_m)  output tile, already in (N, Cout, Ho*Wo) layout
    acc = jnp.dot(w_ref[...], p_ref[0], preferred_element_type=jnp.float32)
    o_ref[0] = (acc + b_ref[...]).astype(o_ref.dtype)


def conv2d_s2k2(x, w, b, *, tile_m=None):
    """Conv2d with kernel_size=2, stride=2, padding=0, dilation=1, bias."""
    N, C, H, W = x.shape
    Cout, Cin, kh, kw = w.shape
    assert C == Cin and kh == 2 and kw == 2

    # PyTorch floor behaviour: odd trailing row/col is dropped.
    Ho, Wo = H // kh, W // kw
    x = x[:, :, : kh * Ho, : kw * Wo]

    K = Cin * kh * kw
    Mn = Ho * Wo

    # --- glue: im2col producing (N, K, Ho*Wo) patches --------------------
    # rows  = (c, i, j)  -> matches w.reshape(Cout, K) column order
    # cols  = (ho, wo)   -> lane axis
    p = (x.reshape(N, C, Ho, kh, Wo, kw)
          .transpose(0, 1, 3, 5, 2, 4)
          .reshape(N, K, Mn))
    wmat = w.reshape(Cout, K)
    bmat = b.reshape(Cout, 1).astype(jnp.float32)

    # Lane-tile selection: largest multiple-of-128 tile dividing Ho*Wo,
    # full extent otherwise (e.g. Ho*Wo = 64 for the 16x16 test input).
    if tile_m is None:
        tile_m = Mn
        for cand in (2048, 1024, 512, 256, 128):
            if Mn % cand == 0:
                tile_m = cand
                break
    grid = (N, Mn // tile_m)

    out = pl.pallas_call(
        _conv_matmul_kernel,
        out_shape=jax.ShapeDtypeStruct((N, Cout, Mn), x.dtype),
        grid_spec=pl.GridSpec(
            grid=grid,
            in_specs=[
                pl.BlockSpec((Cout, K), lambda n, m: (0, 0)),       # weights, resident
                pl.BlockSpec((Cout, 1), lambda n, m: (0, 0)),       # bias, resident
                pl.BlockSpec((1, K, tile_m), lambda n, m: (n, 0, m)),  # patch tile
            ],
            out_specs=pl.BlockSpec((1, Cout, tile_m), lambda n, m: (n, 0, m)),
        ),
        compiler_params=pltpu.CompilerParams(
            # (batch, spatial-tile) axes are independent -> megacore-shardable.
            dimension_semantics=("parallel", "parallel")),
    )(wmat, bmat, p)

    # (N, Cout, Ho*Wo) -> (N, Cout, Ho, Wo): contiguous reshape, no transpose.
    return out.reshape(N, Cout, Ho, Wo)


if __name__ == "__main__":
    key = jax.random.PRNGKey(0)
    kx, kw_, kb = jax.random.split(key, 3)

    # Input consistent with Conv2d(3, 6, 2, stride=2): N=2, C=3, H=W=16
    x = jax.random.normal(kx, (2, 3, 16, 16), dtype=jnp.float32)
    # Deterministic parameter init (kaiming-uniform-ish bound, like nn.Conv2d)
    fan_in = 3 * 2 * 2
    bound = 1.0 / jnp.sqrt(fan_in)
    w = jax.random.uniform(kw_, (6, 3, 2, 2), jnp.float32, -bound, bound)
    b = jax.random.uniform(kb, (6,), jnp.float32, -bound, bound)

    conv = jax.jit(conv2d_s2k2)
    y = conv(x, w, b)
    y = jax.block_until_ready(y)

    # reference check against XLA conv
    y_ref = jax.lax.conv_general_dilated(
        x, w, window_strides=(2, 2), padding="VALID",
        dimension_numbers=("NCHW", "OIHW", "NCHW"),
    ) + b.reshape(1, 6, 1, 1)

    assert y.shape == (2, 6, 8, 8), y.shape
    assert jnp.allclose(y, y_ref, atol=1e-5, rtol=1e-5), \
        float(jnp.max(jnp.abs(y - y_ref)))
    print("KERNEL_OK")
</pallas_src>

<mosaic_0001>
module attributes {stable_mosaic.version = 11 : i64} {
  func.func @_conv_matmul_kernel(%arg0: i32, %arg1: i32, %arg2: memref<6x12xf32, #tpu.memory_space<vmem>>, %arg3: memref<6x1xf32, #tpu.memory_space<vmem>>, %arg4: memref<1x12x64xf32, #tpu.memory_space<vmem>>, %arg5: memref<1x6x64xf32, #tpu.memory_space<vmem>>) attributes {dimension_semantics = [#tpu.dimension_semantics<parallel>, #tpu.dimension_semantics<parallel>], iteration_bounds = array<i64: 2, 1>, scalar_prefetch = 0 : i64, scratch_operands = 0 : i64, tpu.core_type = #tpu.core_type<tc>, window_params = [{pipeline_mode = #tpu.pipeline_mode<synchronous>, transform_indices = @transform_0, window_bounds = array<i64: 6, 12>}, {pipeline_mode = #tpu.pipeline_mode<synchronous>, transform_indices = @transform_1, window_bounds = array<i64: 6, 1>}, {transform_indices = @transform_2, window_bounds = array<i64: 1, 12, 64>}, {transform_indices = @transform_3, window_bounds = array<i64: 1, 6, 64>}]} {
    %c0 = arith.constant 0 : index
    %c0_0 = arith.constant 0 : index
    %0 = vector.load %arg2[%c0, %c0_0] : memref<6x12xf32, #tpu.memory_space<vmem>>, vector<6x12xf32>
    %c0_1 = arith.constant 0 : index
    %c0_2 = arith.constant 0 : index
    %c0_3 = arith.constant 0 : index
    %1 = vector.load %arg4[%c0_1, %c0_2, %c0_3] : memref<1x12x64xf32, #tpu.memory_space<vmem>>, vector<1x12x64xf32>
    %2 = vector.shape_cast %1 : vector<1x12x64xf32> to vector<12x64xf32>
    %cst = arith.constant dense<0.000000e+00> : vector<6x64xf32>
    %3 = tpu.matmul %0, %2, %cst {dimension_numbers = #tpu.dot_dimension_numbers<[1], [0], [0], [1], [0, 0, 1, 1], [], []>} : vector<6x12xf32>, vector<12x64xf32>, vector<6x64xf32> -> vector<6x64xf32>
    %c0_4 = arith.constant 0 : index
    %c0_5 = arith.constant 0 : index
    %4 = vector.load %arg3[%c0_4, %c0_5] : memref<6x1xf32, #tpu.memory_space<vmem>>, vector<6x1xf32>
    %5 = vector.broadcast %4 : vector<6x1xf32> to vector<6x64xf32>
    %6 = arith.addf %3, %5 : vector<6x64xf32>
    %c0_6 = arith.constant 0 : index
    %c0_7 = arith.constant 0 : index
    %c0_8 = arith.constant 0 : index
    %7 = vector.load %arg5[%c0_6, %c0_7, %c0_8] : memref<1x6x64xf32, #tpu.memory_space<vmem>>, vector<1x6x64xf32>
    %8 = vector.shape_cast %7 : vector<1x6x64xf32> to vector<6x64xf32>
    %9 = vector.shape_cast %6 : vector<6x64xf32> to vector<1x6x64xf32>
    tpu.vector_store %arg5[%c0_6, %c0_7, %c0_8], %9 {strides = array<i32>} : memref<1x6x64xf32, #tpu.memory_space<vmem>>, vector<1x6x64xf32>,
    return
  }
  func.func @transform_0(%arg0: i32, %arg1: i32) -> (i32, i32) {
    %c0_i32 = arith.constant 0 : i32
    %c0_i32_0 = arith.constant 0 : i32
    %c0_i32_1 = arith.constant 0 : i32
    return %c0_i32, %c0_i32_0 : i32, i32
  }
  func.func @transform_1(%arg0: i32, %arg1: i32) -> (i32, i32) {
    %c0_i32 = arith.constant 0 : i32
    %c0_i32_0 = arith.constant 0 : i32
    %c0_i32_1 = arith.constant 0 : i32
    return %c0_i32, %c0_i32_0 : i32, i32
  }
  func.func @transform_2(%arg0: i32, %arg1: i32) -> (i32, i32, i32) {
    %c0_i32 = arith.constant 0 : i32
    %c0_i32_0 = arith.constant 0 : i32
    return %arg0, %c0_i32, %arg1 : i32, i32, i32
  }
  func.func @transform_3(%arg0: i32, %arg1: i32) -> (i32, i32, i32) {
    %c0_i32 = arith.constant 0 : i32
    %c0_i32_0 = arith.constant 0 : i32
    return %arg0, %c0_i32, %arg1 : i32, i32, i32
  }
}

</mosaic_0001>

<bundles_post_ra>
// kernel: conv2d_s2k2.1
= control target key start
LH: loop header
LB: loop body
LE: loop exit
PB: predicated region body
PF: predicated region fallthrough
CT: control target
= control target key end

     0   :  { %s464_s12 = smov 0   ;;  %s466_s13 = smov 0   ;;  %s503_s0 = inlined_call_operand.vmem [shape: f32[6,12], index: 0, kind: input, shape index: {}]   ;;  %s504_s1 = inlined_call_operand.vmem [shape: f32[6,1], index: 1, kind: input, shape index: {}]   ;;  %s505_s2 = inlined_call_operand.vmem [shape: f32[2,12,64], index: 2, kind: input, shape index: {}]   ;;  %s506_s3 = inlined_call_operand.vmem [shape: f32[2,6,64], index: 3, kind: output, shape index: {}]  }
   0x1   :  { %s468_s14 = smov 0  }
   0x2 LB: > { %s25_s15 = sadd.s32 1, %s435_s13  ;;  %p370_p0 = scmp.ge.s32.totalorder %s439_s14, 1  ;;  %s439_s14 = sphi %s468_s14, %s13_s14   ;;  %s435_s13 = sphi %s466_s13, %s508_s13   ;;  %s431_s12 = sphi %s464_s12, %s507_s12  }
   0x3   : > { %p27_p1 = scmp.ge.s32.totalorder %s25_s15, 2  ;;  %p156_p2 = scmp.lt.s32.totalorder %s439_s14, 3 }
   0x5   : > { %s510_s15 = smov (%p27_p1, %s25_s15), 0  ;;  %p157_p3 = pnand %p370_p0, %p156_p2 }
   0x6   : > { %p185_p4 = scmp.lt.s32.totalorder (!%p157_p3), %s431_s12, 1 }
   0x7   : > { %160 = sbr.rel (%p157_p3) target bundleno = 215 (0xd7), region = 32 }
   0xc   : > { %v441_v0 = vmov 0.0   ;;  %vm442_vm0 = vmmov 0   ;;  %v203_v1 = vld [vmem:[%s504_s1] sm:$0x3f]  ;;  %s512_s12 = smov (!%p185_p4, %s431_s12), 1  ;;  %v443_v2 = vmov 0  }
   0xd   : > { %382 = vmatprep.subr.mxu0 %v441_v0  ;;  %386 = vmatprep.mubr.msk.f32.mxu0 %vm442_vm0, %v441_v0  ;;  %s378_s18 = sshll.u32 %s512_s12, 4  ;;  %vm213_vm1 = vcmask 1043456   ;;  %v200_v5 = vld [vmem:[%s503_s0] sm:$0x3f]  ;;  %vm209_vm2 = vcmask 97280   ;;  %s373_s24 = sshll.u32 %s512_s12, 3 }
   0xe   : > { %416 = vset.pattern.permute.xlu0 %v443_v2  ;;  %s192_s21 = scalar_lea.vmem %s505_s2, %s378_s18  ;;  %s199_s27 = scalar_lea.vmem %s506_s3, %s373_s24  ;;  %vm287_vm3 = vcmask 521216  }
   0xf   : > { %206 = vperm.xlu0 %416, %v203_v1   ;;  %v202_v3 = vld [vmem:[%s192_s21 + $0x8] sm:$0xf]  ;;  %v201_v4 = vld [vmem:[%s192_s21] sm:$0xff] }
  0x10   : > { %383 = vmatpush3.msk.msra.mxu0 %vm213_vm1, %v202_v3 }
  0x11   : > { %384 = vmatprep.subr.mxu0 %v441_v0 }
  0x12   : > { %385 = vmatpush3.msra.mxu0 %v201_v4 }
  0x13   : > { %387 = vmatmul.mubr.msk.f32.vlgmr.msra.gmra.mxu0 %vm209_vm2, %v200_v5 }
  0x8a   : > { %v207_v6 = vpop.permute.xlu0 %206 }
  0xd3   : > { %v283_v7 = vpop.f32.mrf.mxu0 }
  0xd4   : > { %v284_v8 = vadd.f32 %v283_v7, %v207_v6 }
  0xd5   : > { %v388_v9 = vpop.f32.mrf.mxu0 }
  0xd6   : > { %288 = vst.msk [vmem:[%s199_s27] sm:$0x3f] %vm287_vm3, %v284_v8 }
  0xd7 PF: > { %s13_s14 = sadd.s32 1, %s439_s14   ;;  %s507_s12 = smov %s435_s13 }
  0xd8   : > { %p10_p5 = scmp.ge.s32.totalorder %s13_s14, 4   ;;  %s508_s13 = smov %s510_s15 }
  0xda   :  { %12 = sbr.rel (!%p10_p5) target bundleno = 2 (0x2), region = 62 }

</bundles_post_ra>
